<compile_context>
chip_gen: v7x
topology: tpu7x:2x2x1
jax: 0.10.0
libtpu: 0.0.40
codegen_flags: <defaults>
</compile_context>

<pallas_src>
import functools

import jax
import jax.numpy as jnp
from jax.experimental import pallas as pl
from jax.experimental.pallas import tpu as pltpu

_MIB = 1024 * 1024


def _round_up(x: int, m: int) -> int:
    return (x + m - 1) // m * m


def _vmem_capacity_bytes() -> int:
    """Physical per-core VMEM (128 MiB v5e/v6e, 64 MiB v7x); conservative fallback."""
    try:
        cap = getattr(pltpu.get_tpu_info(), "vmem_capacity_bytes", None)
        if cap:
            return int(cap)
    except Exception:
        pass
    return 64 * _MIB  # assume the smallest (v7x per-core) if the query fails


_VMEM_CAP = _vmem_capacity_bytes()
# Never request the whole physical VMEM (esp. v7x: 64 MiB total) -- leave
# headroom for Mosaic internal scratch / semaphores.  v5e/v6e get ~100 MiB.
_VMEM_BUDGET = int(min(_VMEM_CAP - 12 * _MIB, 100 * _MIB))


def _gelu_exact(x):
    # nn.GELU() default = exact erf formulation, evaluated in f32.  erf runs on
    # EUP/VPU slots which have slack once the kernel is MXU-bound.
    return 0.5 * x * (1.0 + jax.lax.erf(x * 0.7071067811865476))


# ---------------------------------------------------------------------------
# Kernel A (fast path): weights fully resident in VMEM.
#   grid = (token tiles,)   [parallel]
#   Constant index maps on W1/b1/W2/b2 -> they are fetched from HBM once and
#   reused for every token tile (no weight re-streaming).
# ---------------------------------------------------------------------------
def mlp_kernel_resident(x_ref, w1_ref, b1_ref, w2_ref, b2_ref, o_ref):
    h = jnp.dot(x_ref[...], w1_ref[...], preferred_element_type=jnp.float32)
    h = _gelu_exact(h + b1_ref[...].astype(jnp.float32))
    # dropout p=0.0 -> identity
    y = jnp.dot(h.astype(w2_ref.dtype), w2_ref[...],
                preferred_element_type=jnp.float32)
    o_ref[...] = (y + b2_ref[...].astype(jnp.float32)).astype(o_ref.dtype)


# ---------------------------------------------------------------------------
# Kernel B (fallback): hidden-chunked reduction for weights too large to keep
# resident in VMEM (e.g. very large MLPs on v7x's 64 MiB VMEM).
#   grid = (token tiles [parallel], hidden chunks [arbitrary])
# ---------------------------------------------------------------------------
def mlp_kernel_tiled(x_ref, w1_ref, b1_ref, w2_ref, b2_ref, o_ref, acc_ref):
    kh = pl.program_id(1)

    @pl.when(kh == 0)
    def _():
        acc_ref[...] = jnp.zeros_like(acc_ref)

    h = jnp.dot(x_ref[...], w1_ref[...], preferred_element_type=jnp.float32)
    h = _gelu_exact(h + b1_ref[...].astype(jnp.float32))
    # dropout p=0.0 -> identity
    # TODO(synk): stochastic dropout via pltpu.prng_seed/prng_random_bits if p > 0.
    acc_ref[...] += jnp.dot(h.astype(w2_ref.dtype), w2_ref[...],
                            preferred_element_type=jnp.float32)

    @pl.when(kh == pl.num_programs(1) - 1)
    def _():
        o_ref[...] = (acc_ref[...]
                      + b2_ref[...].astype(jnp.float32)).astype(o_ref.dtype)


@functools.partial(jax.jit, static_argnames=("tile_m", "tile_h", "force_mode"))
def mlp_forward(x, w1, b1, w2, b2, *, tile_m=512, tile_h=1536, force_mode=None):
    """x: (B, N, in_feat) -> (B, N, out_feat).

    Weights are (in, hidden) / (hidden, out), biases (hidden,) / (out,).
    `force_mode` in {None, "resident", "tiled"} is for testing only.
    """
    B, N, in_feat = x.shape
    hidden = w1.shape[1]
    out_feat = w2.shape[1]
    tokens = B * N
    dtype = x.dtype
    itemsize = jnp.dtype(dtype).itemsize

    # ---- token tile: MXU-sized, capped at problem size; keep >=2 parallel
    # token tiles when possible so both v7x TensorCores get work.
    tm_full = _round_up(tokens, 8)
    tm = min(tile_m, tm_full)
    if tm == tm_full and tm_full >= 16:
        tm = _round_up(pl.cdiv(tm_full, 2), 8)
    tokens_p = _round_up(tokens, tm)

    # ---- lane-dense feature padding (multiples of 128).
    in_p = _round_up(in_feat, 128)
    hid128 = _round_up(hidden, 128)
    out_p = _round_up(out_feat, 128)

    # ---- mode decision: can 2x weight buffers (Pallas double-buffers even
    # constant-index blocks) + x/out tiles + f32 intermediates fit VMEM?
    w_bytes = itemsize * (in_p * hid128 + hid128 * out_p)
    est_resident = (
        2 * w_bytes
        + 2 * itemsize * (8 * hid128 + 8 * out_p)   # bias blocks
        + 2 * itemsize * tm * in_p                  # x tile (double-buffered)
        + 2 * itemsize * tm * out_p                 # out tile (double-buffered)
        + (4 + itemsize) * tm * hid128              # f32 h + recast copy
        + 4 * tm * out_p                            # f32 y
    )
    resident = est_resident <= _VMEM_BUDGET
    if force_mode == "resident":
        resident = True
    elif force_mode == "tiled":
        resident = False

    if resident:
        th = hid_p = hid128
    else:
        # Balanced hidden chunks (multiples of 128) to minimize zero-padding.
        n_chunks = pl.cdiv(hid128, min(tile_h, hid128))
        th = _round_up(pl.cdiv(hid128, n_chunks), 128)
        hid_p = th * pl.cdiv(hid128, th)

    # ---- pad inputs/weights only when actually needed (no-op for ViT dims).
    # NOTE: for persistently non-aligned weights, pre-pad/cache outside this
    # per-call path to avoid re-materializing padded HBM copies each forward.
    def _maybe_pad(a, shape):
        pads = tuple((0, t - s) for s, t in zip(a.shape, shape))
        if any(p for _, p in pads):
            return jnp.pad(a, pads)
        return a

    x2 = _maybe_pad(x.reshape(tokens, in_feat), (tokens_p, in_p))
    w1p = _maybe_pad(w1, (in_p, hid_p))
    b1p = _maybe_pad(b1.reshape(1, hidden), (1, hid_p))
    w2p = _maybe_pad(w2, (hid_p, out_p))
    b2p = _maybe_pad(b2.reshape(1, out_feat), (1, out_p))

    cost = pl.CostEstimate(
        flops=2 * tokens * hidden * (in_feat + out_feat),
        transcendentals=tokens * hidden,
        bytes_accessed=itemsize * (tokens * (in_feat + out_feat)
                                   + in_feat * hidden + hidden * out_feat
                                   + hidden + out_feat),
    )

    if resident:
        grid = (tokens_p // tm,)
        vmem_limit = int(min(max(int(1.3 * est_resident), 32 * _MIB),
                             _VMEM_BUDGET))
        out2 = pl.pallas_call(
            mlp_kernel_resident,
            out_shape=jax.ShapeDtypeStruct((tokens_p, out_p), dtype),
            grid_spec=pltpu.PrefetchScalarGridSpec(
                num_scalar_prefetch=0,
                grid=grid,
                in_specs=[
                    pl.BlockSpec((tm, in_p), lambda i: (i, 0)),       # x tile
                    pl.BlockSpec((in_p, hid_p), lambda i: (0, 0)),    # W1 resident
                    pl.BlockSpec((1, hid_p), lambda i: (0, 0)),       # b1 resident
                    pl.BlockSpec((hid_p, out_p), lambda i: (0, 0)),   # W2 resident
                    pl.BlockSpec((1, out_p), lambda i: (0, 0)),       # b2 resident
                ],
                out_specs=pl.BlockSpec((tm, out_p), lambda i: (i, 0)),
            ),
            compiler_params=pltpu.CompilerParams(
                dimension_semantics=("parallel",),
                vmem_limit_bytes=vmem_limit,
            ),
            cost_estimate=cost,
        )(x2, w1p, b1p, w2p, b2p)
    else:
        est_tiled = (
            2 * itemsize * (tm * in_p + in_p * th + th * out_p
                            + 8 * th + 8 * out_p + tm * out_p)
            + 4 * tm * out_p                 # f32 accumulator scratch
            + (4 + itemsize) * tm * th       # f32 h + recast copy
        )
        vmem_limit = int(min(max(2 * est_tiled, 32 * _MIB), _VMEM_BUDGET))
        grid = (tokens_p // tm, hid_p // th)
        out2 = pl.pallas_call(
            mlp_kernel_tiled,
            out_shape=jax.ShapeDtypeStruct((tokens_p, out_p), dtype),
            grid_spec=pltpu.PrefetchScalarGridSpec(
                num_scalar_prefetch=0,
                grid=grid,
                in_specs=[
                    pl.BlockSpec((tm, in_p), lambda i, kh: (i, 0)),    # x tile
                    pl.BlockSpec((in_p, th), lambda i, kh: (0, kh)),   # W1 chunk
                    pl.BlockSpec((1, th), lambda i, kh: (0, kh)),      # b1 chunk
                    pl.BlockSpec((th, out_p), lambda i, kh: (kh, 0)),  # W2 chunk
                    pl.BlockSpec((1, out_p), lambda i, kh: (0, 0)),    # b2
                ],
                out_specs=pl.BlockSpec((tm, out_p), lambda i, kh: (i, 0)),
                scratch_shapes=[pltpu.VMEM((tm, out_p), jnp.float32)],
            ),
            compiler_params=pltpu.CompilerParams(
                dimension_semantics=("parallel", "arbitrary"),
                vmem_limit_bytes=vmem_limit,
            ),
            cost_estimate=cost,
        )(x2, w1p, b1p, w2p, b2p)

    return out2[:tokens, :out_feat].reshape(B, N, out_feat)


def init_params(key, in_feat, hidden_feat, out_feat, dtype=jnp.float32):
    # Deterministic synthetic init (shapes match nn.Linear, stored transposed).
    k1, k2, k3, k4 = jax.random.split(key, 4)
    w1 = jax.random.normal(k1, (in_feat, hidden_feat), dtype) * 0.02
    b1 = jax.random.normal(k2, (hidden_feat,), dtype) * 0.02
    w2 = jax.random.normal(k3, (hidden_feat, out_feat), dtype) * 0.02
    b2 = jax.random.normal(k4, (out_feat,), dtype) * 0.02
    return w1, b1, w2, b2


def mlp_reference(x, w1, b1, w2, b2):
    h = jax.nn.gelu(x @ w1 + b1, approximate=False)
    return h @ w2 + b2


if __name__ == "__main__":
    key = jax.random.PRNGKey(0)
    kx, kp = jax.random.split(key)

    # ---- small f32 check, resident fast path (tight tolerance) ----
    B, N = 2, 8
    in_feat, hidden_feat, out_feat = 32, 64, 32
    x = jax.random.normal(kx, (B, N, in_feat), jnp.float32)
    w1, b1, w2, b2 = init_params(kp, in_feat, hidden_feat, out_feat)

    out = jax.block_until_ready(mlp_forward(x, w1, b1, w2, b2))
    ref = mlp_reference(x, w1, b1, w2, b2)
    assert out.shape == (B, N, out_feat)
    assert jnp.allclose(out, ref, atol=2e-5, rtol=2e-5), "f32 mismatch (resident)"

    # ---- medium f32 check, forced tiled fallback (exercises kh reduction) ----
    km1, km2 = jax.random.split(jax.random.PRNGKey(2))
    Bm, Nm, inm, hidm, outm = 2, 64, 256, 1024, 256
    xm = jax.random.normal(km1, (Bm, Nm, inm), jnp.float32)
    mw1, mb1, mw2, mb2 = init_params(km2, inm, hidm, outm)
    outm_v = jax.block_until_ready(
        mlp_forward(xm, mw1, mb1, mw2, mb2, tile_h=384, force_mode="tiled"))
    refm = mlp_reference(xm, mw1, mb1, mw2, mb2)
    assert outm_v.shape == (Bm, Nm, outm)
    assert jnp.allclose(outm_v, refm, atol=5e-4, rtol=5e-4), "f32 mismatch (tiled)"

    # ---- bf16 ViT-B-sized check (token tiling + resident bf16 weights) ----
    B2, N2 = 2, 197
    in2, hid2, out2f = 768, 3072, 768
    kx2, kp2 = jax.random.split(jax.random.PRNGKey(1))
    xb = jax.random.normal(kx2, (B2, N2, in2), jnp.float32).astype(jnp.bfloat16)
    pw1, pb1, pw2, pb2 = init_params(kp2, in2, hid2, out2f)
    pw1, pb1, pw2, pb2 = (t.astype(jnp.bfloat16) for t in (pw1, pb1, pw2, pb2))

    outb = jax.block_until_ready(mlp_forward(xb, pw1, pb1, pw2, pb2))
    refb = mlp_reference(*(t.astype(jnp.float32) for t in (xb, pw1, pb1, pw2, pb2)))
    assert outb.shape == (B2, N2, out2f)
    max_err = float(jnp.max(jnp.abs(outb.astype(jnp.float32) - refb)))
    assert max_err < 5e-2, f"bf16 mismatch vs reference: max abs err {max_err}"

    print("KERNEL_OK")
</pallas_src>

<mosaic_0001>
module attributes {stable_mosaic.version = 11 : i64} {
  func.func @mlp_kernel_resident(%arg0: i32, %arg1: memref<8x128xf32, #tpu.memory_space<vmem>>, %arg2: memref<128x128xf32, #tpu.memory_space<vmem>>, %arg3: memref<1x128xf32, #tpu.memory_space<vmem>>, %arg4: memref<128x128xf32, #tpu.memory_space<vmem>>, %arg5: memref<1x128xf32, #tpu.memory_space<vmem>>, %arg6: memref<8x128xf32, #tpu.memory_space<vmem>>) attributes {dimension_semantics = [#tpu.dimension_semantics<parallel>], iteration_bounds = array<i64: 2>, scalar_prefetch = 0 : i64, scratch_operands = 0 : i64, tpu.core_type = #tpu.core_type<tc>, window_params = [{transform_indices = @transform_0, window_bounds = array<i64: 8, 128>}, {pipeline_mode = #tpu.pipeline_mode<synchronous>, transform_indices = @transform_1, window_bounds = array<i64: 128, 128>}, {pipeline_mode = #tpu.pipeline_mode<synchronous>, transform_indices = @transform_2, window_bounds = array<i64: 1, 128>}, {pipeline_mode = #tpu.pipeline_mode<synchronous>, transform_indices = @transform_3, window_bounds = array<i64: 128, 128>}, {pipeline_mode = #tpu.pipeline_mode<synchronous>, transform_indices = @transform_4, window_bounds = array<i64: 1, 128>}, {transform_indices = @transform_5, window_bounds = array<i64: 8, 128>}]} {
    %c0 = arith.constant 0 : index
    %c0_0 = arith.constant 0 : index
    %0 = vector.load %arg1[%c0, %c0_0] : memref<8x128xf32, #tpu.memory_space<vmem>>, vector<8x128xf32>
    %c0_1 = arith.constant 0 : index
    %c0_2 = arith.constant 0 : index
    %1 = vector.load %arg2[%c0_1, %c0_2] : memref<128x128xf32, #tpu.memory_space<vmem>>, vector<128x128xf32>
    %cst = arith.constant dense<0.000000e+00> : vector<8x128xf32>
    %2 = tpu.matmul %0, %1, %cst {dimension_numbers = #tpu.dot_dimension_numbers<[1], [0], [0], [1], [0, 0, 1, 1], [], []>} : vector<8x128xf32>, vector<128x128xf32>, vector<8x128xf32> -> vector<8x128xf32>
    %c0_3 = arith.constant 0 : index
    %c0_4 = arith.constant 0 : index
    %3 = vector.load %arg3[%c0_3, %c0_4] : memref<1x128xf32, #tpu.memory_space<vmem>>, vector<1x128xf32>
    %4 = vector.broadcast %3 : vector<1x128xf32> to vector<8x128xf32>
    %5 = arith.addf %2, %4 : vector<8x128xf32>
    %cst_5 = arith.constant 5.000000e-01 : f32
    %6 = vector.broadcast %cst_5 : f32 to vector<8x128xf32>
    %7 = arith.mulf %6, %5 : vector<8x128xf32>
    %cst_6 = arith.constant 0.707106769 : f32
    %8 = vector.broadcast %cst_6 : f32 to vector<8x128xf32>
    %9 = arith.mulf %5, %8 : vector<8x128xf32>
    %10 = math.erf %9 : vector<8x128xf32>
    %cst_7 = arith.constant 1.000000e+00 : f32
    %11 = vector.broadcast %cst_7 : f32 to vector<8x128xf32>
    %12 = arith.addf %11, %10 : vector<8x128xf32>
    %13 = arith.mulf %7, %12 : vector<8x128xf32>
    %c0_8 = arith.constant 0 : index
    %c0_9 = arith.constant 0 : index
    %14 = vector.load %arg4[%c0_8, %c0_9] : memref<128x128xf32, #tpu.memory_space<vmem>>, vector<128x128xf32>
    %cst_10 = arith.constant dense<0.000000e+00> : vector<8x128xf32>
    %15 = tpu.matmul %13, %14, %cst_10 {dimension_numbers = #tpu.dot_dimension_numbers<[1], [0], [0], [1], [0, 0, 1, 1], [], []>} : vector<8x128xf32>, vector<128x128xf32>, vector<8x128xf32> -> vector<8x128xf32>
    %c0_11 = arith.constant 0 : index
    %c0_12 = arith.constant 0 : index
    %16 = vector.load %arg5[%c0_11, %c0_12] : memref<1x128xf32, #tpu.memory_space<vmem>>, vector<1x128xf32>
    %17 = vector.broadcast %16 : vector<1x128xf32> to vector<8x128xf32>
    %18 = arith.addf %15, %17 : vector<8x128xf32>
    %c0_13 = arith.constant 0 : index
    %c0_14 = arith.constant 0 : index
    %19 = vector.load %arg6[%c0_13, %c0_14] : memref<8x128xf32, #tpu.memory_space<vmem>>, vector<8x128xf32>
    tpu.vector_store %arg6[%c0_13, %c0_14], %18 {strides = array<i32>} : memref<8x128xf32, #tpu.memory_space<vmem>>, vector<8x128xf32>,
    return
  }
  func.func @transform_0(%arg0: i32) -> (i32, i32) {
    %c0_i32 = arith.constant 0 : i32
    %c0_i32_0 = arith.constant 0 : i32
    return %arg0, %c0_i32 : i32, i32
  }
  func.func @transform_1(%arg0: i32) -> (i32, i32) {
    %c0_i32 = arith.constant 0 : i32
    %c0_i32_0 = arith.constant 0 : i32
    %c0_i32_1 = arith.constant 0 : i32
    return %c0_i32, %c0_i32_0 : i32, i32
  }
  func.func @transform_2(%arg0: i32) -> (i32, i32) {
    %c0_i32 = arith.constant 0 : i32
    %c0_i32_0 = arith.constant 0 : i32
    %c0_i32_1 = arith.constant 0 : i32
    return %c0_i32, %c0_i32_0 : i32, i32
  }
  func.func @transform_3(%arg0: i32) -> (i32, i32) {
    %c0_i32 = arith.constant 0 : i32
    %c0_i32_0 = arith.constant 0 : i32
    %c0_i32_1 = arith.constant 0 : i32
    return %c0_i32, %c0_i32_0 : i32, i32
  }
  func.func @transform_4(%arg0: i32) -> (i32, i32) {
    %c0_i32 = arith.constant 0 : i32
    %c0_i32_0 = arith.constant 0 : i32
    %c0_i32_1 = arith.constant 0 : i32
    return %c0_i32, %c0_i32_0 : i32, i32
  }
  func.func @transform_5(%arg0: i32) -> (i32, i32) {
    %c0_i32 = arith.constant 0 : i32
    %c0_i32_0 = arith.constant 0 : i32
    return %arg0, %c0_i32 : i32, i32
  }
}

</mosaic_0001>

<bundles_post_ra>
// kernel: mlp_forward.1
= control target key start
LH: loop header
LB: loop body
LE: loop exit
PB: predicated region body
PF: predicated region fallthrough
CT: control target
= control target key end

     0   :  { %s683_s18 = smov 0   ;;  %s829_s0 = inlined_call_operand.vmem [shape: f32[16,128], index: 0, kind: input, shape index: {}]   ;;  %s830_s1 = inlined_call_operand.vmem [shape: f32[128,128], index: 1, kind: input, shape index: {}]   ;;  %s831_s2 = inlined_call_operand.vmem [shape: f32[1,128], index: 2, kind: input, shape index: {}]   ;;  %s832_s3 = inlined_call_operand.vmem [shape: f32[128,128], index: 3, kind: input, shape index: {}]   ;;  %s833_s4 = inlined_call_operand.vmem [shape: f32[1,128], index: 4, kind: input, shape index: {}]   ;;  %s834_s5 = inlined_call_operand.vmem [shape: f32[16,128], index: 5, kind: output, shape index: {}]  }
   0x1 LB: > { %s466_s19 = sadd.s32 4294967295, %s648_s18   ;;  %p470_p0 = scmp.ge.s32.totalorder %s648_s18, 1  ;;  %s648_s18 = sphi %s683_s18, %s15_s18  }
   0x2   : > { %p186_p1 = scmp.lt.s32.totalorder %s648_s18, 3 }
   0x4   : > { %p187_p2 = pnand %p470_p0, %p186_p1 }
   0x5   : > { %v221_v0 = vld [vmem:[%s830_s1] sm:$0xff] (!%p187_p2)  ;;  %v222_v1 = vld [vmem:[%s830_s1 + $0x8] sm:$0xff] (!%p187_p2)  ;;  %v223_v2 = vld [vmem:[%s830_s1 + $0x10] sm:$0xff] (!%p187_p2)  ;;  %v650_v3 = vmov (!%p187_p2), 0.0|0.0   ;;  %vm651_vm0 = vmmov (!%p187_p2), 0   ;;  %v652_v6 = vmov (!%p187_p2), 0.0  }
   0x6   : > { %190 = sbr.rel (%p187_p2) target bundleno = 485 (0x1e5), region = 40  ;;  %581 = vmatprep.subr.bf16.mxu0 (!%p187_p2), %v650_v3  ;;  %v582_v4 = vpack.c.bf16 (!%p187_p2), %v222_v1, %v221_v0  ;;  %v224_v5 = vld [vmem:[%s830_s1 + $0x18] sm:$0xff] (!%p187_p2)  ;;  %543 = vmatprep.mubr.msk.f32.mxu0 (!%p187_p2), %vm651_vm0, %v652_v6  ;;  %v225_v8 = vld [vmem:[%s830_s1 + $0x20] sm:$0xff] (!%p187_p2)  ;;  %v226_v9 = vld [vmem:[%s830_s1 + $0x28] sm:$0xff] (!%p187_p2)  ;;  %p212_p3 = scmp.lt.s32.totalorder (!%p187_p2), %s466_s19, 1 }
   0x7   : > { %605 = vmatprep.subr.bf16.mxu1 (!%p187_p2), %v650_v3  ;;  %578 = vmatprep.mubr.msk.f32.mxu1 (!%p187_p2), %vm651_vm0, %v652_v6  ;;  %v585_v7 = vpack.c.bf16 (!%p187_p2), %v224_v5, %v223_v2  ;;  %v319_v10 = vld [vmem:[%s832_s3] sm:$0xff] (!%p187_p2)  ;;  %v320_v11 = vld [vmem:[%s832_s3 + $0x8] sm:$0xff] (!%p187_p2)  ;;  %v321_v13 = vld [vmem:[%s832_s3 + $0x10] sm:$0xff] (!%p187_p2)  ;;  %v588_v15 = vpack.c.bf16 (!%p187_p2), %v226_v9, %v225_v8 }
   0x8   : > { %583 = vmatpush3.bf16.msra.mxu0 (!%p187_p2), %v582_v4  ;;  %v606_v12 = vpack.c.bf16 (!%p187_p2), %v320_v11, %v319_v10  ;;  %v322_v14 = vld [vmem:[%s832_s3 + $0x18] sm:$0xff] (!%p187_p2)  ;;  %v227_v16 = vld [vmem:[%s830_s1 + $0x30] sm:$0xff] (!%p187_p2)  ;;  %v323_v19 = vld [vmem:[%s832_s3 + $0x20] sm:$0xff] (!%p187_p2) }
   0x9   : > { %584 = vmatprep.subr.bf16.mxu0 (!%p187_p2), %v650_v3  ;;  %v228_v17 = vld [vmem:[%s830_s1 + $0x38] sm:$0xff] (!%p187_p2)  ;;  %v609_v18 = vpack.c.bf16 (!%p187_p2), %v322_v14, %v321_v13  ;;  %v324_v20 = vld [vmem:[%s832_s3 + $0x28] sm:$0xff] (!%p187_p2)  ;;  %v229_v22 = vld [vmem:[%s830_s1 + $0x40] sm:$0xff] (!%p187_p2) }
   0xa   : > { %607 = vmatpush3.bf16.msra.mxu1 (!%p187_p2), %v606_v12  ;;  %v591_v21 = vpack.c.bf16 (!%p187_p2), %v228_v17, %v227_v16  ;;  %v230_v23 = vld [vmem:[%s830_s1 + $0x48] sm:$0xff] (!%p187_p2)  ;;  %v612_v24 = vpack.c.bf16 (!%p187_p2), %v324_v20, %v323_v19  ;;  %v231_v26 = vld [vmem:[%s830_s1 + $0x50] sm:$0xff] (!%p187_p2)  ;;  %v232_v27 = vld [vmem:[%s830_s1 + $0x58] sm:$0xff] (!%p187_p2) }
   0xb   : > { %608 = vmatprep.subr.bf16.mxu1 (!%p187_p2), %v650_v3  ;;  %v594_v25 = vpack.c.bf16 (!%p187_p2), %v230_v23, %v229_v22  ;;  %v597_v28 = vpack.c.bf16 (!%p187_p2), %v232_v27, %v231_v26  ;;  %v233_v29 = vld [vmem:[%s830_s1 + $0x60] sm:$0xff] (!%p187_p2)  ;;  %v234_v30 = vld [vmem:[%s830_s1 + $0x68] sm:$0xff] (!%p187_p2)  ;;  %v235_v32 = vld [vmem:[%s830_s1 + $0x70] sm:$0xff] (!%p187_p2) }
   0xc   : > { %586 = vmatpush3.bf16.msra.mxu0 (!%p187_p2), %v585_v7  ;;  %v600_v31 = vpack.c.bf16 (!%p187_p2), %v234_v30, %v233_v29  ;;  %v236_v33 = vld [vmem:[%s830_s1 + $0x78] sm:$0xff] (!%p187_p2)  ;;  %v325_v36 = vld [vmem:[%s832_s3 + $0x30] sm:$0xff] (!%p187_p2)  ;;  %v327_v39 = vld [vmem:[%s832_s3 + $0x40] sm:$0xff] (!%p187_p2) }
   0xd   : > { %587 = vmatprep.subr.bf16.mxu0 %v650_v3  ;;  %s836_s19 = smov (!%p212_p3, %s466_s19), 1  ;;  %v603_v34 = vpack.c.bf16 %v236_v33, %v235_v32  ;;  %v326_v37 = vld [vmem:[%s832_s3 + $0x38] sm:$0xff]  ;;  %v328_v40 = vld [vmem:[%s832_s3 + $0x48] sm:$0xff]  ;;  %v329_v42 = vld [vmem:[%s832_s3 + $0x50] sm:$0xff] }
   0xe   : > { %610 = vmatpush3.bf16.msra.mxu1 %v609_v18  ;;  %s471_s16 = sshll.u32 %s836_s19, 3  ;;  %v615_v38 = vpack.c.bf16 %v326_v37, %v325_v36  ;;  %v618_v41 = vpack.c.bf16 %v328_v40, %v327_v39  ;;  %v330_v43 = vld [vmem:[%s832_s3 + $0x58] sm:$0xff]  ;;  %v331_v45 = vld [vmem:[%s832_s3 + $0x60] sm:$0xff]  ;;  %v332_v46 = vld [vmem:[%s832_s3 + $0x68] sm:$0xff] }
   0xf   : > { %611 = vmatprep.subr.bf16.mxu1 %v650_v3  ;;  %s215_s21 = scalar_lea.vmem %s829_s0, %s471_s16  ;;  %v621_v44 = vpack.c.bf16 %v330_v43, %v329_v42  ;;  %v624_v47 = vpack.c.bf16 %v332_v46, %v331_v45  ;;  %v333_v48 = vld [vmem:[%s832_s3 + $0x70] sm:$0xff]  ;;  %v334_v49 = vld [vmem:[%s832_s3 + $0x78] sm:$0xff]  ;;  %v473_v51 = vld [vmem:[%s831_s2] ss:$0 sm:$0xff]  ;;  %s219_s26 = scalar_lea.vmem %s834_s5, %s471_s16 }
  0x10   : > { %589 = vmatpush3.bf16.msra.mxu0 %v588_v15  ;;  %v220_v35 = vld [vmem:[%s215_s21] sm:$0xff]  ;;  %v627_v50 = vpack.c.bf16 %v334_v49, %v333_v48 }
  0x11   : > { %590 = vmatprep.subr.bf16.mxu0 %v650_v3  ;;  %v474_v60 = vld [vmem:[%s833_s4] ss:$0 sm:$0xff] }
  0x12   : > { %613 = vmatpush3.bf16.msra.mxu1 %v612_v24 }
  0x13   : > { %614 = vmatprep.subr.bf16.mxu1 %v650_v3 }
  0x14   : > { %592 = vmatpush3.bf16.msra.mxu0 %v591_v21 }
  0x15   : > { %593 = vmatprep.subr.bf16.mxu0 %v650_v3 }
  0x16   : > { %616 = vmatpush3.bf16.msra.mxu1 %v615_v38 }
  0x17   : > { %617 = vmatprep.subr.bf16.mxu1 %v650_v3 }
  0x18   : > { %595 = vmatpush3.bf16.msra.mxu0 %v594_v25 }
  0x19   : > { %596 = vmatprep.subr.bf16.mxu0 %v650_v3 }
  0x1a   : > { %619 = vmatpush3.bf16.msra.mxu1 %v618_v41 }
  0x1b   : > { %620 = vmatprep.subr.bf16.mxu1 %v650_v3 }
  0x1c   : > { %598 = vmatpush3.bf16.msra.mxu0 %v597_v28 }
  0x1d   : > { %599 = vmatprep.subr.bf16.mxu0 %v650_v3 }
  0x1e   : > { %622 = vmatpush3.bf16.msra.mxu1 %v621_v44 }
  0x1f   : > { %623 = vmatprep.subr.bf16.mxu1 %v650_v3 }
  0x20   : > { %601 = vmatpush3.bf16.msra.mxu0 %v600_v31 }
  0x21   : > { %602 = vmatprep.subr.bf16.mxu0 %v650_v3 }
  0x22   : > { %625 = vmatpush3.bf16.msra.mxu1 %v624_v47 }
  0x23   : > { %626 = vmatprep.subr.bf16.mxu1 %v650_v3 }
  0x24   : > { %604 = vmatpush3.bf16.msra.mxu0 %v603_v34 }
  0x26   : > { %628 = vmatpush3.bf16.msra.mxu1 %v627_v50 }
  0x27   : > { %544 = vmatmul.mubr.f32.vlgmr.msra.gmra.mrb[0].mxu0 %v220_v35 }
  0xfa   : > { %v310_v52 = vpop.f32.mrb[0].mxu0 }
  0xfb   : > { %v311_v53 = vadd.f32 %v473_v51, %v310_v52  ;;  %v545_v54 = vpop.f32.mrb[1].mxu0 }
  0xfd   : > { %v315_v55 = vmul.f32 0.70710677, %v311_v53  ;;  %v314_v57 = vmul.f32 0.5, %v311_v53 }
  0xff   : > { %640 = verf.f32 %v315_v55 }
 0x109   : > { %v641_v56 = vpop.eup %640 }
 0x10a   : > { %v317_v58 = vadd.f32 1.0, %v641_v56 }
 0x10c   : > { %v318_v59 = vmul.f32 %v317_v58, %v314_v57 }
 0x10e   : > { %579 = vmatmul.mubr.f32.vlgmr.msra.gmra.mrb[0].mxu1 %v318_v59 }
 0x1e1   : > { %v408_v61 = vpop.f32.mrb[0].mxu1 }
 0x1e2   : > { %v409_v62 = vadd.f32 %v474_v60, %v408_v61  ;;  %v580_v63 = vpop.f32.mrb[1].mxu1 }
 0x1e4   : > { %412 = vst [vmem:[%s219_s26] sm:$0xff] %v409_v62 }
 0x1e5 PF: > { %s15_s18 = sadd.s32 1, %s648_s18  }
 0x1e6   : > { %p12_p4 = scmp.ge.s32.totalorder %s15_s18, 4  }
 0x1e8   :  { %14 = sbr.rel (!%p12_p4) target bundleno = 1 (0x1), region = 70 }

</bundles_post_ra>
